<compile_context>
chip_gen: v5e
topology: v5e:2x2
jax: 0.10.0
libtpu: 0.0.40
codegen_flags: <defaults>
</compile_context>

<pallas_src>
import functools

import jax
import jax.numpy as jnp
from jax.experimental import pallas as pl
from jax.experimental.pallas import tpu as pltpu

_MiB = 1024 * 1024
_INV_SQRT2 = 0.7071067811865476


def _round_up(x, m):
    return (x + m - 1) // m * m


def _vmem_capacity_bytes():
    try:
        info = pltpu.get_tpu_info()
        cap = int(getattr(info, "vmem_capacity_bytes", 0))
        if cap > 0:
            return cap
    except Exception:
        pass
    return 64 * _MiB  # v7x has the smallest physical VMEM -> safe default


def choose_config(M, in_dim, inner_dim, out_dim, *,
                  compute_dtype=jnp.bfloat16, out_dtype=jnp.float32,
                  tile_m_cap=256):
    """Static (Python-int) tiling configuration: VMEM-budget & divisor aware."""
    c_item = jnp.dtype(compute_dtype).itemsize
    o_item = jnp.dtype(out_dtype).itemsize

    vmem_phys = _vmem_capacity_bytes()
    budget = min(int(vmem_phys * 0.70), 96 * _MiB)

    # Feature padding: lane-dense (multiple of 128) where it matters; tiny
    # in_dim stays unpadded (full-extent K block is legal and avoids 4x zeros).
    if in_dim % 128 == 0:
        in_p = in_dim
    elif in_dim < 128:
        in_p = _round_up(in_dim, 8)
    else:
        in_p = _round_up(in_dim, 128)
    out_p = _round_up(out_dim, 128)
    inner_p = _round_up(inner_dim, 128)

    # Token tile: multiple of 8, capped; prefer >= 2 tiles for v7x megacore.
    M8 = max(8, _round_up(M, 8))
    tile_m = min(tile_m_cap, M8)
    if M8 // tile_m < 2 and M8 >= 16:
        tile_m = max(8, _round_up(M8 // 2, 8))

    def vmem_need(tm, ti, nj):
        w1 = in_p * 2 * ti * c_item
        b1 = 2 * ti * 4
        w2 = ti * out_p * c_item
        b2 = out_p * 4
        xb = tm * in_p * c_item
        ob = tm * out_p * o_item
        acc = 0 if nj == 1 else tm * out_p * 4
        return 2 * (w1 + b1 + w2 + b2 + xb + ob) + acc  # x2 = double buffering

    # Inner tile: largest 128-multiple divisor of inner_p that fits the budget
    # (divisor-aware: never inflates the reduction dim with extra zero tiles).
    n_blocks = inner_p // 128
    tile_inner, n_j = 128, n_blocks
    for d in range(n_blocks, 0, -1):
        if n_blocks % d:
            continue
        ti = d * 128
        nj = n_blocks // d
        if vmem_need(tile_m, ti, nj) <= budget:
            tile_inner, n_j = ti, nj
            break
    # Last resort: shrink the token tile until we fit.
    while vmem_need(tile_m, tile_inner, n_j) > budget and tile_m > 8:
        tile_m = max(8, _round_up(tile_m // 2, 8))

    need = vmem_need(tile_m, tile_inner, n_j)
    vmem_limit = int(min(max(need + 16 * _MiB, 32 * _MiB), vmem_phys))

    return dict(in_p=in_p, inner_p=inner_p, out_p=out_p,
                tile_m=tile_m, tile_inner=tile_inner, n_j=n_j,
                vmem_limit_bytes=vmem_limit)


def prepare_feed_forward_weights(wv, bv, wg, bg, w2, b2, cfg, *,
                                 compute_dtype=jnp.bfloat16):
    """Pad + cast + tile-interleave weights ONCE (hoisted out of the hot path)."""
    in_dim, inner_dim = wv.shape
    out_dim = w2.shape[1]
    in_p, inner_p, out_p = cfg["in_p"], cfg["inner_p"], cfg["out_p"]
    tile_inner, n_j = cfg["tile_inner"], cfg["n_j"]

    wv_p = jnp.pad(wv, ((0, in_p - in_dim), (0, inner_p - inner_dim))).astype(compute_dtype)
    wg_p = jnp.pad(wg, ((0, in_p - in_dim), (0, inner_p - inner_dim))).astype(compute_dtype)
    # Per inner tile j the columns are [Wv_j | Wg_j] -> one matmul yields v & g.
    w1 = jnp.concatenate([wv_p.reshape(in_p, n_j, tile_inner),
                          wg_p.reshape(in_p, n_j, tile_inner)],
                         axis=-1).reshape(in_p, 2 * inner_p)

    bv_p = jnp.pad(bv, (0, inner_p - inner_dim)).astype(jnp.float32)
    bg_p = jnp.pad(bg, (0, inner_p - inner_dim)).astype(jnp.float32)
    b1 = jnp.concatenate([bv_p.reshape(n_j, tile_inner),
                          bg_p.reshape(n_j, tile_inner)],
                         axis=-1).reshape(1, 2 * inner_p)

    w2_p = jnp.pad(w2, ((0, inner_p - inner_dim), (0, out_p - out_dim))).astype(compute_dtype)
    b2_p = jnp.pad(b2, (0, out_p - out_dim)).reshape(1, out_p).astype(jnp.float32)
    return w1, b1, w2_p, b2_p


def _geglu(vg, tile_inner):
    """v * GELU(gate), exact erf GELU (matches torch.nn.GELU() default), f32."""
    v = vg[:, :tile_inner]
    g = vg[:, tile_inner:]
    return v * (0.5 * g * (1.0 + jax.lax.erf(g * jnp.float32(_INV_SQRT2))))


def _ff_kernel_resident(x_ref, w1_ref, b1_ref, w2_ref, b2_ref, o_ref):
    """Weight-resident fast path: single inner tile, no accumulator scratch."""
    vg = jnp.dot(x_ref[...], w1_ref[...],
                 preferred_element_type=jnp.float32) + b1_ref[...]
    a = _geglu(vg, w2_ref.shape[0]).astype(w2_ref.dtype)
    # TODO(synk): nn.Dropout(0.1) is identity in eval mode; train-mode dropout
    # (pltpu.prng_random_bits mask) is intentionally not applied here.
    o_ref[...] = (jnp.dot(a, w2_ref[...], preferred_element_type=jnp.float32)
                  + b2_ref[...]).astype(o_ref.dtype)


def _ff_kernel_tiled(x_ref, w1_ref, b1_ref, w2_ref, b2_ref, o_ref, acc_ref):
    """General path: inner_dim tiled on the trailing ('arbitrary') reduction axis."""
    j = pl.program_id(1)

    @pl.when(j == 0)
    def _init():
        acc_ref[...] = jnp.zeros_like(acc_ref)

    vg = jnp.dot(x_ref[...], w1_ref[...],
                 preferred_element_type=jnp.float32) + b1_ref[...]
    a = _geglu(vg, w2_ref.shape[0]).astype(w2_ref.dtype)
    acc_ref[...] += jnp.dot(a, w2_ref[...], preferred_element_type=jnp.float32)

    @pl.when(j == pl.num_programs(1) - 1)
    def _finalize():
        o_ref[...] = (acc_ref[...] + b2_ref[...]).astype(o_ref.dtype)


@functools.partial(jax.jit,
                   static_argnames=("out_dim", "tile_m", "tile_inner",
                                    "vmem_limit_bytes", "compute_dtype"))
def feed_forward_apply(x, w1, b1, w2, b2, *, out_dim, tile_m, tile_inner,
                       vmem_limit_bytes, compute_dtype=jnp.bfloat16):
    """x: (batch, seq, in_dim) -> (batch, seq, out_dim), weights pre-prepared."""
    batch, seq, in_dim = x.shape
    in_p = w1.shape[0]
    inner_p, out_p = w2.shape
    n_j = inner_p // tile_inner

    M = batch * seq
    M_pad = _round_up(M, tile_m)
    n_i = M_pad // tile_m

    x2d = x.reshape(M, in_dim)
    if M_pad != M or in_p != in_dim:
        x2d = jnp.pad(x2d, ((0, M_pad - M), (0, in_p - in_dim)))
    x2d = x2d.astype(compute_dtype)

    flops = 2 * M_pad * in_p * (2 * inner_p) + 2 * M_pad * inner_p * out_p
    bytes_accessed = (x2d.size * x2d.dtype.itemsize
                      + w1.size * w1.dtype.itemsize
                      + w2.size * w2.dtype.itemsize
                      + (b1.size + b2.size) * 4
                      + M_pad * out_p * x.dtype.itemsize)
    cost = pl.CostEstimate(flops=int(flops),
                           transcendentals=int(M_pad * inner_p),
                           bytes_accessed=int(bytes_accessed))
    out_shape = jax.ShapeDtypeStruct((M_pad, out_p), x.dtype)

    if n_j == 1:
        out2d = pl.pallas_call(
            _ff_kernel_resident,
            out_shape=out_shape,
            grid_spec=pltpu.PrefetchScalarGridSpec(
                num_scalar_prefetch=0,
                grid=(n_i,),
                in_specs=[
                    pl.BlockSpec((tile_m, in_p), lambda i: (i, 0)),        # x tile
                    pl.BlockSpec((in_p, 2 * inner_p), lambda i: (0, 0)),   # [Wv|Wg] (resident)
                    pl.BlockSpec((1, 2 * inner_p), lambda i: (0, 0)),      # [bv|bg]
                    pl.BlockSpec((inner_p, out_p), lambda i: (0, 0)),      # W2 (resident)
                    pl.BlockSpec((1, out_p), lambda i: (0, 0)),            # b2
                ],
                out_specs=pl.BlockSpec((tile_m, out_p), lambda i: (i, 0)),
            ),
            compiler_params=pltpu.CompilerParams(
                dimension_semantics=("parallel",),
                vmem_limit_bytes=vmem_limit_bytes),
            cost_estimate=cost,
        )(x2d, w1, b1, w2, b2)
    else:
        out2d = pl.pallas_call(
            _ff_kernel_tiled,
            out_shape=out_shape,
            grid_spec=pltpu.PrefetchScalarGridSpec(
                num_scalar_prefetch=0,
                grid=(n_i, n_j),
                in_specs=[
                    pl.BlockSpec((tile_m, in_p), lambda i, j: (i, 0)),          # x tile
                    pl.BlockSpec((in_p, 2 * tile_inner), lambda i, j: (0, j)),  # [Wv_j|Wg_j]
                    pl.BlockSpec((1, 2 * tile_inner), lambda i, j: (0, j)),     # [bv_j|bg_j]
                    pl.BlockSpec((tile_inner, out_p), lambda i, j: (j, 0)),     # W2_j
                    pl.BlockSpec((1, out_p), lambda i, j: (0, 0)),              # b2
                ],
                out_specs=pl.BlockSpec((tile_m, out_p), lambda i, j: (i, 0)),
                scratch_shapes=[pltpu.VMEM((tile_m, out_p), jnp.float32)],
            ),
            compiler_params=pltpu.CompilerParams(
                dimension_semantics=("parallel", "arbitrary"),
                vmem_limit_bytes=vmem_limit_bytes),
            cost_estimate=cost,
        )(x2d, w1, b1, w2, b2)

    return out2d[:M, :out_dim].reshape(batch, seq, out_dim)


def _reference(x2d, wv, bv, wg, bg, w2, b2, compute_dtype=jnp.bfloat16):
    """Same numerics as the kernel: bf16 matmul operands, f32 accumulation.

    NOTE: bf16 operand casting is a deliberate precision tradeoff vs the f32
    PyTorch reference; documented per the performance review.
    """
    xc = x2d.astype(compute_dtype)
    v = jnp.dot(xc, wv.astype(compute_dtype),
                preferred_element_type=jnp.float32) + bv
    g = jnp.dot(xc, wg.astype(compute_dtype),
                preferred_element_type=jnp.float32) + bg
    a = v * (0.5 * g * (1.0 + jax.lax.erf(g * jnp.float32(_INV_SQRT2))))
    return jnp.dot(a.astype(compute_dtype), w2.astype(compute_dtype),
                   preferred_element_type=jnp.float32) + b2


if __name__ == "__main__":
    # Module config: FeedForward(in_dim=32, out_dim=32, mult=4) -> inner_dim=128
    in_dim, out_dim, mult = 32, 32, 4
    inner_dim = in_dim * mult
    batch, seq = 2, 8

    key = jax.random.PRNGKey(0)
    kx, k1, k2, k3, k4, k5, k6 = jax.random.split(key, 7)

    x = jax.random.normal(kx, (batch, seq, in_dim), dtype=jnp.float32)

    # Deterministic synthetic parameters. PyTorch proj.weight (2*inner, in) is
    # represented by its two transposed halves: wv (value) and wg (gate).
    scale1 = 1.0 / jnp.sqrt(jnp.float32(in_dim))
    wv = jax.random.uniform(k1, (in_dim, inner_dim), jnp.float32, -scale1, scale1)
    wg = jax.random.uniform(k2, (in_dim, inner_dim), jnp.float32, -scale1, scale1)
    bv = jax.random.uniform(k3, (inner_dim,), jnp.float32, -scale1, scale1)
    bg = jax.random.uniform(k4, (inner_dim,), jnp.float32, -scale1, scale1)

    scale2 = 1.0 / jnp.sqrt(jnp.float32(inner_dim))
    w2 = jax.random.uniform(k5, (inner_dim, out_dim), jnp.float32, -scale2, scale2)
    b2 = jax.random.uniform(k6, (out_dim,), jnp.float32, -scale2, scale2)

    # 1) Static tiling config (pure Python, shape-only).
    cfg = choose_config(batch * seq, in_dim, inner_dim, out_dim,
                        out_dtype=x.dtype)

    # 2) One-time weight preparation (hoisted out of the per-call hot path).
    w1_p, b1_p, w2_p, b2_p = jax.block_until_ready(
        prepare_feed_forward_weights(wv, bv, wg, bg, w2, b2, cfg))

    # 3) Kernel call.
    out = feed_forward_apply(x, w1_p, b1_p, w2_p, b2_p,
                             out_dim=out_dim,
                             tile_m=cfg["tile_m"],
                             tile_inner=cfg["tile_inner"],
                             vmem_limit_bytes=cfg["vmem_limit_bytes"])
    out = jax.block_until_ready(out)

    ref = _reference(x.reshape(-1, in_dim), wv, bv, wg, bg, w2, b2)
    ref = ref.reshape(batch, seq, out_dim)

    assert out.shape == (batch, seq, out_dim)
    assert jnp.allclose(out, ref, atol=5e-3, rtol=5e-3), "mismatch vs reference"

    print("KERNEL_OK")
</pallas_src>

<mosaic_0001>
module attributes {stable_mosaic.version = 11 : i64} {
  func.func @_ff_kernel_resident(%arg0: i32, %arg1: memref<8x32xbf16, #tpu.memory_space<vmem>>, %arg2: memref<32x256xbf16, #tpu.memory_space<vmem>>, %arg3: memref<1x256xf32, #tpu.memory_space<vmem>>, %arg4: memref<128x128xbf16, #tpu.memory_space<vmem>>, %arg5: memref<1x128xf32, #tpu.memory_space<vmem>>, %arg6: memref<8x128xf32, #tpu.memory_space<vmem>>) attributes {dimension_semantics = [#tpu.dimension_semantics<parallel>], iteration_bounds = array<i64: 2>, scalar_prefetch = 0 : i64, scratch_operands = 0 : i64, tpu.core_type = #tpu.core_type<tc>, window_params = [{transform_indices = @transform_0, window_bounds = array<i64: 8, 32>}, {pipeline_mode = #tpu.pipeline_mode<synchronous>, transform_indices = @transform_1, window_bounds = array<i64: 32, 256>}, {pipeline_mode = #tpu.pipeline_mode<synchronous>, transform_indices = @transform_2, window_bounds = array<i64: 1, 256>}, {pipeline_mode = #tpu.pipeline_mode<synchronous>, transform_indices = @transform_3, window_bounds = array<i64: 128, 128>}, {pipeline_mode = #tpu.pipeline_mode<synchronous>, transform_indices = @transform_4, window_bounds = array<i64: 1, 128>}, {transform_indices = @transform_5, window_bounds = array<i64: 8, 128>}]} {
    %c0 = arith.constant 0 : index
    %c0_0 = arith.constant 0 : index
    %0 = vector.load %arg1[%c0, %c0_0] : memref<8x32xbf16, #tpu.memory_space<vmem>>, vector<8x32xbf16>
    %c0_1 = arith.constant 0 : index
    %c0_2 = arith.constant 0 : index
    %1 = vector.load %arg2[%c0_1, %c0_2] : memref<32x256xbf16, #tpu.memory_space<vmem>>, vector<32x256xbf16>
    %cst = arith.constant dense<0.000000e+00> : vector<8x256xf32>
    %2 = tpu.matmul %0, %1, %cst {dimension_numbers = #tpu.dot_dimension_numbers<[1], [0], [0], [1], [0, 0, 1, 1], [], []>} : vector<8x32xbf16>, vector<32x256xbf16>, vector<8x256xf32> -> vector<8x256xf32>
    %c0_3 = arith.constant 0 : index
    %c0_4 = arith.constant 0 : index
    %3 = vector.load %arg3[%c0_3, %c0_4] : memref<1x256xf32, #tpu.memory_space<vmem>>, vector<1x256xf32>
    %4 = vector.broadcast %3 : vector<1x256xf32> to vector<8x256xf32>
    %5 = arith.addf %2, %4 : vector<8x256xf32>
    %6 = vector.extract_strided_slice %5 {offsets = [0, 0], sizes = [8, 128], strides = [1, 1]} : vector<8x256xf32> to vector<8x128xf32>
    %7 = vector.extract_strided_slice %5 {offsets = [0, 128], sizes = [8, 128], strides = [1, 1]} : vector<8x256xf32> to vector<8x128xf32>
    %cst_5 = arith.constant 5.000000e-01 : f32
    %8 = vector.broadcast %cst_5 : f32 to vector<8x128xf32>
    %9 = arith.mulf %8, %7 : vector<8x128xf32>
    %cst_6 = arith.constant 0.707106769 : f32
    %10 = vector.broadcast %cst_6 : f32 to vector<8x128xf32>
    %11 = arith.mulf %7, %10 : vector<8x128xf32>
    %12 = math.erf %11 : vector<8x128xf32>
    %cst_7 = arith.constant 1.000000e+00 : f32
    %13 = vector.broadcast %cst_7 : f32 to vector<8x128xf32>
    %14 = arith.addf %13, %12 : vector<8x128xf32>
    %15 = arith.mulf %9, %14 : vector<8x128xf32>
    %16 = arith.mulf %6, %15 : vector<8x128xf32>
    %17 = arith.truncf %16 : vector<8x128xf32> to vector<8x128xbf16>
    %c0_8 = arith.constant 0 : index
    %c0_9 = arith.constant 0 : index
    %18 = vector.load %arg4[%c0_8, %c0_9] : memref<128x128xbf16, #tpu.memory_space<vmem>>, vector<128x128xbf16>
    %cst_10 = arith.constant dense<0.000000e+00> : vector<8x128xf32>
    %19 = tpu.matmul %17, %18, %cst_10 {dimension_numbers = #tpu.dot_dimension_numbers<[1], [0], [0], [1], [0, 0, 1, 1], [], []>} : vector<8x128xbf16>, vector<128x128xbf16>, vector<8x128xf32> -> vector<8x128xf32>
    %c0_11 = arith.constant 0 : index
    %c0_12 = arith.constant 0 : index
    %20 = vector.load %arg5[%c0_11, %c0_12] : memref<1x128xf32, #tpu.memory_space<vmem>>, vector<1x128xf32>
    %21 = vector.broadcast %20 : vector<1x128xf32> to vector<8x128xf32>
    %22 = arith.addf %19, %21 : vector<8x128xf32>
    %c0_13 = arith.constant 0 : index
    %c0_14 = arith.constant 0 : index
    %23 = vector.load %arg6[%c0_13, %c0_14] : memref<8x128xf32, #tpu.memory_space<vmem>>, vector<8x128xf32>
    tpu.vector_store %arg6[%c0_13, %c0_14], %22 {strides = array<i32>} : memref<8x128xf32, #tpu.memory_space<vmem>>, vector<8x128xf32>,
    return
  }
  func.func @transform_0(%arg0: i32) -> (i32, i32) {
    %c0_i32 = arith.constant 0 : i32
    %c0_i32_0 = arith.constant 0 : i32
    return %arg0, %c0_i32 : i32, i32
  }
  func.func @transform_1(%arg0: i32) -> (i32, i32) {
    %c0_i32 = arith.constant 0 : i32
    %c0_i32_0 = arith.constant 0 : i32
    %c0_i32_1 = arith.constant 0 : i32
    return %c0_i32, %c0_i32_0 : i32, i32
  }
  func.func @transform_2(%arg0: i32) -> (i32, i32) {
    %c0_i32 = arith.constant 0 : i32
    %c0_i32_0 = arith.constant 0 : i32
    %c0_i32_1 = arith.constant 0 : i32
    return %c0_i32, %c0_i32_0 : i32, i32
  }
  func.func @transform_3(%arg0: i32) -> (i32, i32) {
    %c0_i32 = arith.constant 0 : i32
    %c0_i32_0 = arith.constant 0 : i32
    %c0_i32_1 = arith.constant 0 : i32
    return %c0_i32, %c0_i32_0 : i32, i32
  }
  func.func @transform_4(%arg0: i32) -> (i32, i32) {
    %c0_i32 = arith.constant 0 : i32
    %c0_i32_0 = arith.constant 0 : i32
    %c0_i32_1 = arith.constant 0 : i32
    return %c0_i32, %c0_i32_0 : i32, i32
  }
  func.func @transform_5(%arg0: i32) -> (i32, i32) {
    %c0_i32 = arith.constant 0 : i32
    %c0_i32_0 = arith.constant 0 : i32
    return %arg0, %c0_i32 : i32, i32
  }
}

</mosaic_0001>

<bundles_post_ra>
// kernel: feed_forward_apply.1
= control target key start
LH: loop header
LB: loop body
LE: loop exit
PB: predicated region body
PF: predicated region fallthrough
CT: control target
= control target key end

     0   :  { %10 = vsyncpa [#allocation3], 0  ;;  %s793_s0 = inlined_call_operand.vmem [shape: bf16[16,32], index: 0, kind: input, shape index: {}]   ;;  %s794_s1 = inlined_call_operand.hbm [shape: bf16[32,256], index: 1, kind: input, shape index: {}]   ;;  %s795_s2 = inlined_call_operand.vmem [shape: f32[1,256], index: 2, kind: input, shape index: {}]   ;;  %s796_s3 = inlined_call_operand.hbm [shape: bf16[128,128], index: 3, kind: input, shape index: {}]   ;;  %s797_s4 = inlined_call_operand.vmem [shape: f32[1,128], index: 4, kind: input, shape index: {}]   ;;  %s798_s5 = inlined_call_operand.vmem [shape: f32[16,128], index: 5, kind: output, shape index: {}]  }
   0x1   :  { %11 = vsyncpa [#allocation5], 0  ;;  %s743_s18 = smov 0  }
   0x2 LB: > { %s169_s21 = sshll.u32 %s794_s1, 4  ;;  %s519_s22 = sadd.s32 4294967295, %s705_s18   ;;  %s705_s18 = sphi %s743_s18, %s17_s18   ;;  %s170_s21 = int_to_ptr.hbm [resolvable:$true] %s169_s21 }
   0x3   : > { %p521_p0 = scmp.ge.s32.totalorder %s705_s18, 1  ;;  %p158_p1 = scmp.lt.s32.totalorder %s705_s18, 3 }
   0x4   : > { %p610_p2 = scmp.eq.s32.totalorder %s519_s22, 0  ;;  %s707_s24 = smov [#allocation2]  }
   0x5   : > { %p754_p3 = pnand %p521_p0, %p158_p1  ;;  %s171_s25 = sshll.u32 %s707_s24, 4  ;;  %s172_s25 = int_to_ptr.vmem [resolvable:$true] %s171_s25 }
   0x6   : > { %s186_s28 = sshll.u32 %s796_s3, 4  ;;  %s708_s29 = smov [#allocation4]   ;;  %s187_s28 = int_to_ptr.hbm [resolvable:$true] %s186_s28 }
   0x7   : > { %p603_p4 = pneg %p754_p3  ;;  %s188_s30 = sshll.u32 %s708_s29, 4  ;;  %s189_s30 = int_to_ptr.vmem [resolvable:$true] %s188_s30 }
   0x8   : > { %s709_s6 = smov 128   ;;  %s710_s7 = smov 8  }
   0x9   : > { %p604_p5 = pnand %p610_p2, %p603_p4  ;;  %s711_s8 = smov 64  }
   0xa   : > { %s712_s9 = smov 4   ;;  %214 = sbr.rel (%p754_p3) target bundleno = 352 (0x160), region = 40 }
   0xb   : > { %606 = dma.hbm_to_vmem [thread:$0]  (!%p604_p5), %s170_s21, 512, %s172_s25, [#allocation3], %s709_s6, %s709_s6, %s710_s7  }
   0xc   : > { %609 = dma.hbm_to_vmem [thread:$0]  (!%p604_p5), %s187_s28, 1024, %s189_s30, [#allocation5], %s711_s8, %s711_s8, %s712_s9  }
   0xf   : > { %696 = dma.done.wait (%p610_p2), [#allocation3], 512  }
  0x10   : > { %698 = vsyncadd (%p610_p2), [#allocation3], 4294966784 }
  0x11   : > { %700 = dma.done.wait (%p610_p2), [#allocation5], 1024  }
  0x12   : > { %702 = vsyncadd (%p610_p2), [#allocation5], 4294966272  ;;  %p246_p6 = scmp.lt.s32.totalorder %s519_s22, 1  ;;  %v585_v0 = vld [vmem:[#allocation2 + $0x14] sm:$0xf]  ;;  %vm286_vm0 = vcmask 261120  }
  0x13   : > { %v542_v1 = vld [vmem:[#allocation2 + $0x18] sm:$0xf0]  ;;  %v583_v2 = vld [vmem:[#allocation2 + $0x4] sm:$0xf]  ;;  %v534_v4 = vld [vmem:[#allocation2 + $0x8] sm:$0xf0] }
  0x14   : > { %s801_s22 = smov (!%p246_p6, %s519_s22), 1  ;;  %v545_v3 = vor.u32 %v585_v0, %v542_v1  ;;  %v540_v5 = vld [vmem:[#allocation2 + $0x10] sm:$0xf]  ;;  %v586_v6 = vld [vmem:[#allocation2 + $0x14] sm:$0xf0]  ;;  %v537_v9 = vor.u32 %v583_v2, %v534_v4  ;;  %v592_v19 = vld [vmem:[#allocation4 + $0x28] sm:$0xff] }
  0x15   : > { %s528_s10 = sshll.u32 %s801_s22, 2  ;;  %v532_v7 = vld [vmem:[#allocation2] sm:$0xf]  ;;  %v584_v8 = vld [vmem:[#allocation2 + $0x4] sm:$0xf0]  ;;  %v541_v10 = vor.u32 %v586_v6, %v540_v5  ;;  %v594_v14 = vld [vmem:[#allocation4 + $0x38] sm:$0xff] }
  0x16   : > { %309 = vmatpush.bf16.msra.mxu1 %v545_v3  ;;  %s249_s13 = scalar_lea.vmem %s793_s0, %s528_s10  ;;  %v533_v11 = vor.u32 %v584_v8, %v532_v7  ;;  %v779_v13 = vld [vmem:[%s795_s2] sm:$0x3]  ;;  %430 = vmatpush.bf16.msra.mxu2 %v594_v14  ;;  %v593_v16 = vld [vmem:[#allocation4 + $0x30] sm:$0xff]  ;;  %v590_v27 = vld [vmem:[#allocation4 + $0x18] sm:$0xff]  ;;  %s529_s16 = sshll.u32 %s801_s22, 3 }
  0x17   : > { %296 = vmatpush.bf16.msra.mxu0 %v541_v10  ;;  %v255_v12 = vld [vmem:[%s249_s13] sm:$0xf]  ;;  %v263_v15 = vperm.slane %v779_v13, 1  ;;  %v589_v33 = vld [vmem:[#allocation4 + $0x10] sm:$0xff]  ;;  %v588_v36 = vld [vmem:[#allocation4 + $0x8] sm:$0xff]  ;;  %v262_v63 = vperm.slane %v779_v13, 0  ;;  %s253_s23 = scalar_lea.vmem %s798_s5, %s529_s16 }
  0x18   : > { %v591_v22 = vld [vmem:[#allocation4 + $0x20] sm:$0xff] }
  0x19   : > { %v587_v41 = vld [vmem:[#allocation4] sm:$0xff] }
  0x1a   : > { %310 = vmatpush.bf16.msra.mxu1 %v537_v9  ;;  %431 = vmatpush.bf16.msra.mxu2 %v593_v16  ;;  %v628_v7 = vld [vmem:[%s797_s4] ss:$0 sm:$0xff] }
  0x1b   : > { %297 = vmatpush.bf16.msra.mxu0 %v533_v11 }
  0x1d   : > { %547 = vmatmul.msk.bf16.vlgmr.msra.gmra.mxu1 %vm286_vm0, %v255_v12 }
  0x1e   : > { %546 = vmatmul.msk.bf16.vlgmr.msra.gmra.mxu0 %vm286_vm0, %v255_v12  ;;  %432 = vmatpush.bf16.msra.mxu2 %v592_v19 }
  0x22   : > { %433 = vmatpush.bf16.msra.mxu2 %v591_v22 }
  0x26   : > { %434 = vmatpush.bf16.msra.mxu2 %v590_v27 }
  0x2a   : > { %435 = vmatpush.bf16.msra.mxu2 %v589_v33 }
  0x2e   : > { %436 = vmatpush.bf16.msra.mxu2 %v588_v36 }
  0x32   : > { %437 = vmatpush.bf16.msra.mxu2 %v587_v41 }
  0x9a   : > { %v312_v17 = vpop.f32.mrf.mxu1 }
  0x9b   : > { %v313_v18 = vadd.f32 %v312_v17, %v263_v15  ;;  %v299_v30 = vpop.f32.mrf.mxu0 }
  0x9c   : > { %v300_v2 = vadd.f32 %v299_v30, %v262_v63 }
  0x9d   : > { %v317_v20 = vmul.f32 0.70710677, %v313_v18  ;;  %v316_v1 = vmul.f32 0.5, %v313_v18 }
  0x9f   : > { %v318_v21 = vmul.f32 %v317_v20, %v317_v20 }
  0xa1   : > { %v319_v23 = vmin.f32 %v318_v21, 16.0 }
  0xa2   : > { %v314_v24 = vpop.f32.mrf.mxu1 }
  0xa3   : > { %v320_v25 = vmul.f32 2.1237322e-06, %v319_v23  ;;  %v331_v26 = vmul.f32 3.8918573e-05, %v319_v23  ;;  %v301_v40 = vpop.f32.mrf.mxu0 }
  0xa5   : > { %v321_v28 = vadd.f32 0.00028619796, %v320_v25  ;;  %v332_v29 = vadd.f32 0.001143296, %v331_v26 }
  0xa7   : > { %v322_v31 = vmul.f32 %v321_v28, %v319_v23  ;;  %v333_v32 = vmul.f32 %v332_v29, %v319_v23 }
  0xa9   : > { %v334_v34 = vadd.f32 0.014752088, %v333_v32  ;;  %v323_v35 = vadd.f32 0.0036580483, %v322_v31 }
  0xab   : > { %v335_v37 = vmul.f32 %v334_v34, %v319_v23  ;;  %v324_v39 = vmul.f32 %v323_v35, %v319_v23 }
  0xad   : > { %v336_v38 = vadd.f32 0.112945676, %v335_v37  ;;  %v325_v44 = vadd.f32 0.05243302, %v324_v39 }
  0xaf   : > { %v337_v42 = vmul.f32 %v336_v38, %v319_v23  ;;  %v326_v47 = vmul.f32 %v325_v44, %v319_v23 }
  0xb1   : > { %v338_v43 = vadd.f32 0.4994258, %v337_v42  ;;  %v327_v48 = vadd.f32 0.18741608, %v326_v47 }
  0xb3   : > { %v339_v45 = vmul.f32 %v338_v43, %v319_v23  ;;  %v328_v50 = vmul.f32 %v327_v48, %v319_v23 }
  0xb5   : > { %v340_v46 = vadd.f32 1.0, %v339_v45  ;;  %v329_v54 = vadd.f32 1.1283791, %v328_v50 }
  0xb7   : > { %629 = vrcp.f32 %v340_v46  ;;  %v352_v53 = vand.u32 2147483648, %v340_v46  ;;  %v350_v56 = vand.u32 2147483647, %v340_v46  ;;  %vm346_vm2 = vweird.f32 %v340_v46 }
  0xb8   : > { %v330_v59 = vmul.f32 %v329_v54, %v317_v20 }
  0xb9   : > { %v353_v58 = vor.u32 1.1754944e-38, %v352_v53  ;;  %vm351_vm4 = vcmp.eq.f32.partialorder %v350_v56, 8.507059e+37 }
  0xbd   : > { %v630_v49 = vpop.eup %629 }
  0xbe   : > { %v342_v51 = vmul.f32 %v630_v49, %v340_v46  ;;  %vm347_vm1 = vweird.f32 %v630_v49 }
  0xbf   : > { %vm348_vm3 = vmor %vm346_vm2, %vm347_vm1 }
  0xc0   : > { %v343_v52 = vsub.f32 1.0, %v342_v51 }
  0xc2   : > { %v344_v55 = vmul.f32 %v630_v49, %v343_v52 }
  0xc4   : > { %v345_v57 = vadd.f32 %v630_v49, %v344_v55 }
  0xc6   : > { %v349_v60 = vsel %vm348_vm3, %v630_v49, %v345_v57 }
  0xc7   : > { %v354_v61 = vsel %vm351_vm4, %v353_v58, %v349_v60 }
  0xc8   : > { %v355_v62 = vmul.f32 %v354_v61, %v330_v59 }
  0xca   : > { %v548_v0 = vclamps-f32 %v355_v62, 1.0 }
  0xcc   : > { %v358_v3 = vadd.f32 1.0, %v548_v0 }
  0xce   : > { %v359_v4 = vmul.f32 %v358_v3, %v316_v1 }
  0xd0   : > { %v360_v5 = vmul.f32 %v359_v4, %v300_v2 }
  0xd2   : > { %v361_v6 = vpack.c.bf16 %v360_v5, %v360_v5 }
  0xd4   : > { %438 = vmatmul.bf16.vlgmr.msra.gmra.mxu2 %v361_v6 }
 0x157   : > { %v439_v8 = vpop.f32.mrf.mxu2 }
 0x158   : > { %v440_v9 = vadd.f32 %v628_v7, %v439_v8 }
 0x15a   : > { %443 = vst [vmem:[%s253_s23] sm:$0xff] %v440_v9 }
 0x15f   : > { %v441_v10 = vpop.f32.mrf.mxu2 }
 0x160 PF: > { %s17_s18 = sadd.s32 1, %s705_s18  }
 0x161   : > { %p14_p7 = scmp.ge.s32.totalorder %s17_s18, 4  }
 0x163   :  { %16 = sbr.rel (!%p14_p7) target bundleno = 2 (0x2), region = 79 }
 0x168   :  { %463 = vsyncpa [#allocation3], 1 }
 0x169   :  { %465 = vsyncpa [#allocation3 + $0x1], 1 }
 0x16a   :  { %466 = vsyncpa [#allocation5], 1 }

</bundles_post_ra>
